<compile_context>
chip_gen: v5e
topology: v5e:2x2
jax: 0.10.0
libtpu: 0.0.40
codegen_flags: <defaults>
</compile_context>

<pallas_src>
import functools

import jax
import jax.numpy as jnp
from jax.experimental import pallas as pl
from jax.experimental.pallas import tpu as pltpu


def _round_up(x, m):
    return (x + m - 1) // m * m


# --------------------------------------------------------------------------
# Kernel 1 (fused): synthetic encoder projection + masked mean pooling
#   per sequence tile:  h = gelu(x_tile @ W + b)      (bf16 MXU, f32 acc)
#                       acc  += sum_s h * mask
#                       msum += sum_s mask
#   finalize:           pooled = acc * reciprocal(max(msum, 1e-9))
# --------------------------------------------------------------------------
def _encode_pool_kernel(x_ref, mask_ref, w_ref, b_ref, o_ref, acc_ref, msum_ref):
    s = pl.program_id(1)

    @pl.when(s == 0)
    def _():
        acc_ref[...] = jnp.zeros_like(acc_ref)
        msum_ref[...] = jnp.zeros_like(msum_ref)

    tb, ts, hp = x_ref.shape
    x = x_ref[...].reshape(tb * ts, hp)                       # bf16 (tb*ts, hp)
    h = jnp.dot(x, w_ref[...], preferred_element_type=jnp.float32)
    h = h + b_ref[...]                                        # (1, hp) f32 bias
    # tanh-approx GELU (EUP tanh; constants are trace-time Python floats)
    c = 0.7978845608028654                                    # sqrt(2/pi)
    h = 0.5 * h * (1.0 + jnp.tanh(c * (h + 0.044715 * h * h * h)))
    h = h.reshape(tb, ts, hp)

    m = mask_ref[...]                                         # (tb, ts, 1) f32
    acc_ref[...] += jnp.sum(h * m, axis=1)                    # (tb, hp)
    msum_ref[...] += jnp.sum(m, axis=1)                       # (tb, 1)

    @pl.when(s == pl.num_programs(1) - 1)
    def _():
        inv = pl.reciprocal(jnp.maximum(msum_ref[...], 1e-9), approx=True)
        o_ref[...] = acc_ref[...] * inv


def encode_pool(x_bf16, mask3_f32, w_enc_bf16, b_enc_f32, *, seq_tile):
    """x: (B, S_pad, H_pad) bf16, mask3: (B, S_pad, 1) f32 -> pooled (B, H_pad) f32."""
    B, s_pad, hp = x_bf16.shape
    ts = seq_tile
    n_s = pl.cdiv(s_pad, ts)

    cost = pl.CostEstimate(
        flops=2 * B * s_pad * hp * hp + 12 * B * s_pad * hp,
        transcendentals=B * s_pad * hp,
        bytes_accessed=(B * s_pad * hp * 2            # x (bf16)
                        + B * s_pad * 4               # mask
                        + hp * hp * 2 + hp * 4        # W + bias
                        + B * hp * 4),                # pooled out
    )

    return pl.pallas_call(
        _encode_pool_kernel,
        grid_spec=pltpu.PrefetchScalarGridSpec(
            num_scalar_prefetch=0,
            grid=(1, n_s),                            # (batch tiles, seq tiles)
            in_specs=[
                pl.BlockSpec((B, ts, hp), lambda b, s: (b, s, 0)),   # x tile
                pl.BlockSpec((B, ts, 1), lambda b, s: (b, s, 0)),    # mask tile
                pl.BlockSpec((hp, hp), lambda b, s: (0, 0)),         # W_enc
                pl.BlockSpec((1, hp), lambda b, s: (0, 0)),          # b_enc
            ],
            out_specs=pl.BlockSpec((B, hp), lambda b, s: (b, 0)),
            scratch_shapes=[pltpu.VMEM((B, hp), jnp.float32),
                            pltpu.VMEM((B, 1), jnp.float32)],
        ),
        out_shape=jax.ShapeDtypeStruct((B, hp), jnp.float32),
        compiler_params=pltpu.CompilerParams(
            dimension_semantics=("parallel", "arbitrary"),
            vmem_limit_bytes=48 * 1024 * 1024),
        cost_estimate=cost,
    )(x_bf16, mask3_f32, w_enc_bf16, b_enc_f32)


# --------------------------------------------------------------------------
# Kernel 2: score_pair with a single lane-dense fused head
#   feats  = [q, q*a, q-a, a]                     (B, 4*H_pad)   bf16
#   scores = feats @ W_head + b_head              (B, OUT_PAD)   f32
#     col 0        -> triple score
#     cols 1..R    -> relation scores
#     col R+1      -> overwritten with L2 distance sqrt(sum((q-a)^2))
# --------------------------------------------------------------------------
def _score_pair_kernel(q_ref, a_ref, w_ref, b_ref, o_ref, *, num_rel):
    q = q_ref[...]                                            # (B, hp) f32
    a = a_ref[...]
    feats = jnp.concatenate([q, q * a, q - a, a], axis=1).astype(jnp.bfloat16)
    scores = jnp.dot(feats, w_ref[...],
                     preferred_element_type=jnp.float32) + b_ref[...]

    diff = q - a
    dist = jnp.sqrt(jnp.sum(diff * diff, axis=1, keepdims=True))   # (B, 1)
    # TODO(synk): no epsilon inside sqrt -> gradient undefined at q==a
    #             (forward-only here, matches the PyTorch module exactly).
    col = jax.lax.broadcasted_iota(jnp.int32, scores.shape, 1)
    o_ref[...] = jnp.where(col == (num_rel + 1), dist, scores)


def score_pair(q_emb, a_emb, w_head_bf16, b_head_f32, num_relations, hidden_size):
    B, hp = q_emb.shape
    out_pad = w_head_bf16.shape[1]
    full = lambda shape: pl.BlockSpec(shape, lambda i: (0,) * len(shape))
    out = pl.pallas_call(
        functools.partial(_score_pair_kernel, num_rel=num_relations),
        grid=(1,),
        in_specs=[full((B, hp)), full((B, hp)),
                  full((4 * hp, out_pad)), full((1, out_pad))],
        out_specs=full((B, out_pad)),
        out_shape=jax.ShapeDtypeStruct((B, out_pad), jnp.float32),
        compiler_params=pltpu.CompilerParams(
            dimension_semantics=("parallel",),
            vmem_limit_bytes=48 * 1024 * 1024),
    )(q_emb, a_emb, w_head_bf16, b_head_f32)
    R = num_relations
    return {"triple_scores": out[:, 0:1],
            "relation_scores": out[:, 1:1 + R],
            "dists": out[:, 1 + R]}


# --------------------------------------------------------------------------
# TextBiEncoder wrapper (plain-JAX glue: embedding gathers, padding, params)
# --------------------------------------------------------------------------
class TextBiEncoderPallas:
    def __init__(self, num_entities, num_relations, hidden_size, vocab_size,
                 pool_strategy="mean", seq_block=128, key=jax.random.PRNGKey(0)):
        assert pool_strategy == "mean"  # TODO(synk): 'max'/'cls'/None pooling not wired
        self.num_relations = num_relations
        self.hidden_size = hidden_size
        self.seq_block = seq_block

        H = hidden_size
        hp = _round_up(H, 128)                                # lane-dense hidden
        self.h_pad = hp
        R = num_relations
        out_pad = max(128, _round_up(R + 2, 128))             # lane-dense head out
        self.out_pad = out_pad

        ks = jax.random.split(key, 5)
        scale = 0.02

        def pad_cols(a, cols):
            return jnp.pad(a, ((0, 0), (0, cols - a.shape[1])))

        # embeddings and encoder weight stored padded to hp and cast to bf16
        # (padded rows/cols are zero, so results equal the un-padded math).
        word = scale * jax.random.normal(ks[0], (vocab_size, H), jnp.float32)
        typ = scale * jax.random.normal(ks[1], (2, H), jnp.float32)
        wenc = scale * jax.random.normal(ks[2], (H, H), jnp.float32)
        self.word_emb = pad_cols(word, hp).astype(jnp.bfloat16)           # (V, hp)
        self.type_emb = pad_cols(typ, hp).astype(jnp.bfloat16)            # (2, hp)
        self.w_enc = jnp.pad(wenc, ((0, hp - H), (0, hp - H))).astype(jnp.bfloat16)
        self.b_enc = jnp.zeros((1, hp), jnp.float32)

        # heads stored (in, out) = PyTorch weight transposed; triple head (->1)
        # and relation head (->R) fused into one padded (4*hp, out_pad) weight.
        w_triple = scale * jax.random.normal(ks[3], (4 * H, 1), jnp.float32)
        w_rel = scale * jax.random.normal(ks[4], (4 * H, R), jnp.float32)
        blocks = []
        for j in range(4):
            blk = jnp.zeros((hp, out_pad), jnp.float32)
            blk = blk.at[:H, 0:1].set(w_triple[j * H:(j + 1) * H])
            blk = blk.at[:H, 1:1 + R].set(w_rel[j * H:(j + 1) * H])
            blocks.append(blk)
        self.w_head = jnp.concatenate(blocks, axis=0).astype(jnp.bfloat16)  # (4*hp, out_pad)
        self.b_head = jnp.zeros((1, out_pad), jnp.float32)

    def _encode(self, input_ids, token_type_ids, attention_mask):
        B, S = input_ids.shape
        ts = min(self.seq_block, _round_up(S, 8))
        ts = _round_up(ts, 8)
        s_pad = _round_up(S, ts)
        pad = s_pad - S
        if pad:
            input_ids = jnp.pad(input_ids, ((0, 0), (0, pad)))
            token_type_ids = jnp.pad(token_type_ids, ((0, 0), (0, pad)))
            attention_mask = jnp.pad(attention_mask, ((0, 0), (0, pad)))

        # embedding gather + add (bf16) — TODO(synk): fold into the Pallas
        # pipeline via scalar-prefetch DMA gather instead of an XLA gather.
        x = self.word_emb[input_ids] + self.type_emb[token_type_ids]   # (B, s_pad, hp)
        mask3 = attention_mask.astype(jnp.float32)[:, :, None]         # (B, s_pad, 1)
        return encode_pool(x, mask3, self.w_enc, self.b_enc, seq_tile=ts)

    def __call__(self, input_ids_A, token_type_ids_A, attention_mask_A,
                 input_ids_B=None, token_type_ids_B=None, attention_mask_B=None):
        emb_A = self._encode(input_ids_A, token_type_ids_A, attention_mask_A)
        if input_ids_B is None:
            return emb_A[:, :self.hidden_size]
        emb_B = self._encode(input_ids_B, token_type_ids_B, attention_mask_B)
        return score_pair(emb_A, emb_B, self.w_head, self.b_head,
                          self.num_relations, self.hidden_size)


# --------------------------------------------------------------------------
if __name__ == "__main__":
    B, S, H = 2, 16, 32
    VOCAB, NUM_REL, NUM_ENT = 64, 8, 10

    key = jax.random.PRNGKey(0)
    k1, k2, kparams = jax.random.split(key, 3)

    input_ids_A = jax.random.randint(k1, (B, S), 0, VOCAB, dtype=jnp.int32)
    input_ids_B = jax.random.randint(k2, (B, S), 0, VOCAB, dtype=jnp.int32)
    token_type_ids_A = jnp.zeros((B, S), jnp.int32)
    token_type_ids_B = jnp.zeros((B, S), jnp.int32)
    # some trailing padding positions
    attention_mask_A = jnp.array([[1] * S, [1] * (S - 3) + [0, 0, 0]], jnp.int32)
    attention_mask_B = jnp.array([[1] * (S - 1) + [0], [1] * S], jnp.int32)

    model = TextBiEncoderPallas(num_entities=NUM_ENT, num_relations=NUM_REL,
                                hidden_size=H, vocab_size=VOCAB,
                                pool_strategy="mean", seq_block=8, key=kparams)

    out = model(input_ids_A, token_type_ids_A, attention_mask_A,
                input_ids_B, token_type_ids_B, attention_mask_B)
    out = jax.block_until_ready(out)

    assert out["triple_scores"].shape == (B, 1)
    assert out["relation_scores"].shape == (B, NUM_REL)
    assert out["dists"].shape == (B,)
    assert all(bool(jnp.all(jnp.isfinite(v))) for v in out.values())

    # single-segment path (returns pooled embeddings only)
    emb_only = jax.block_until_ready(
        model(input_ids_A, token_type_ids_A, attention_mask_A))
    assert emb_only.shape == (B, H)
    assert bool(jnp.all(jnp.isfinite(emb_only)))

    print("KERNEL_OK")
</pallas_src>

<mosaic_0001>
module attributes {stable_mosaic.version = 11 : i64} {
  func.func @_encode_pool_kernel(%arg0: i32, %arg1: i32, %arg2: memref<2x8x128xbf16, #tpu.memory_space<vmem>>, %arg3: memref<2x8x1xf32, #tpu.memory_space<vmem>>, %arg4: memref<128x128xbf16, #tpu.memory_space<vmem>>, %arg5: memref<1x128xf32, #tpu.memory_space<vmem>>, %arg6: memref<2x128xf32, #tpu.memory_space<vmem>>, %arg7: memref<2x128xf32, #tpu.memory_space<vmem>>, %arg8: memref<2x1xf32, #tpu.memory_space<vmem>>) attributes {dimension_semantics = [#tpu.dimension_semantics<parallel>, #tpu.dimension_semantics<arbitrary>], iteration_bounds = array<i64: 1, 2>, scalar_prefetch = 0 : i64, scratch_operands = 2 : i64, tpu.core_type = #tpu.core_type<tc>, window_params = [{transform_indices = @transform_0, window_bounds = array<i64: 2, 8, 128>}, {transform_indices = @transform_1, window_bounds = array<i64: 2, 8, 1>}, {pipeline_mode = #tpu.pipeline_mode<synchronous>, transform_indices = @transform_2, window_bounds = array<i64: 128, 128>}, {pipeline_mode = #tpu.pipeline_mode<synchronous>, transform_indices = @transform_3, window_bounds = array<i64: 1, 128>}, {transform_indices = @transform_4, window_bounds = array<i64: 2, 128>}]} {
    %c0_i32 = arith.constant 0 : i32
    %0 = arith.cmpi eq, %arg1, %c0_i32 : i32
    %1 = arith.extui %0 : i1 to i32
    %c0_i32_0 = arith.constant 0 : i32
    %2 = arith.cmpi ne, %1, %c0_i32_0 : i32
    scf.if %2 {
      %cst_25 = arith.constant 0.000000e+00 : f32
      %38 = vector.broadcast %cst_25 : f32 to vector<2x128xf32>
      %c0_26 = arith.constant 0 : index
      %c0_27 = arith.constant 0 : index
      %39 = vector.load %arg7[%c0_26, %c0_27] : memref<2x128xf32, #tpu.memory_space<vmem>>, vector<2x128xf32>
      tpu.vector_store %arg7[%c0_26, %c0_27], %38 {strides = array<i32>} : memref<2x128xf32, #tpu.memory_space<vmem>>, vector<2x128xf32>,
      %cst_28 = arith.constant 0.000000e+00 : f32
      %40 = vector.broadcast %cst_28 : f32 to vector<2x1xf32>
      %c0_29 = arith.constant 0 : index
      %c0_30 = arith.constant 0 : index
      %41 = vector.load %arg8[%c0_29, %c0_30] : memref<2x1xf32, #tpu.memory_space<vmem>>, vector<2x1xf32>
      tpu.vector_store %arg8[%c0_29, %c0_30], %40 {strides = array<i32>} : memref<2x1xf32, #tpu.memory_space<vmem>>, vector<2x1xf32>,
    } else {
    }
    %c0 = arith.constant 0 : index
    %c0_1 = arith.constant 0 : index
    %c0_2 = arith.constant 0 : index
    %3 = vector.load %arg2[%c0, %c0_1, %c0_2] : memref<2x8x128xbf16, #tpu.memory_space<vmem>>, vector<2x8x128xbf16>
    %4 = vector.shape_cast %3 : vector<2x8x128xbf16> to vector<16x128xbf16>
    %c0_3 = arith.constant 0 : index
    %c0_4 = arith.constant 0 : index
    %5 = vector.load %arg4[%c0_3, %c0_4] : memref<128x128xbf16, #tpu.memory_space<vmem>>, vector<128x128xbf16>
    %cst = arith.constant dense<0.000000e+00> : vector<16x128xf32>
    %6 = tpu.matmul %4, %5, %cst {dimension_numbers = #tpu.dot_dimension_numbers<[1], [0], [0], [1], [0, 0, 1, 1], [], []>} : vector<16x128xbf16>, vector<128x128xbf16>, vector<16x128xf32> -> vector<16x128xf32>
    %c0_5 = arith.constant 0 : index
    %c0_6 = arith.constant 0 : index
    %7 = vector.load %arg5[%c0_5, %c0_6] : memref<1x128xf32, #tpu.memory_space<vmem>>, vector<1x128xf32>
    %8 = vector.broadcast %7 : vector<1x128xf32> to vector<16x128xf32>
    %9 = arith.addf %6, %8 : vector<16x128xf32>
    %cst_7 = arith.constant 5.000000e-01 : f32
    %10 = vector.broadcast %cst_7 : f32 to vector<16x128xf32>
    %11 = arith.mulf %10, %9 : vector<16x128xf32>
    %cst_8 = arith.constant 4.471500e-02 : f32
    %12 = vector.broadcast %cst_8 : f32 to vector<16x128xf32>
    %13 = arith.mulf %12, %9 : vector<16x128xf32>
    %14 = arith.mulf %13, %9 : vector<16x128xf32>
    %15 = arith.mulf %14, %9 : vector<16x128xf32>
    %16 = arith.addf %9, %15 : vector<16x128xf32>
    %cst_9 = arith.constant 0.797884583 : f32
    %17 = vector.broadcast %cst_9 : f32 to vector<16x128xf32>
    %18 = arith.mulf %17, %16 : vector<16x128xf32>
    %19 = math.tanh %18 : vector<16x128xf32>
    %cst_10 = arith.constant 1.000000e+00 : f32
    %20 = vector.broadcast %cst_10 : f32 to vector<16x128xf32>
    %21 = arith.addf %20, %19 : vector<16x128xf32>
    %22 = arith.mulf %11, %21 : vector<16x128xf32>
    %23 = vector.shape_cast %22 : vector<16x128xf32> to vector<2x8x128xf32>
    %c0_11 = arith.constant 0 : index
    %c0_12 = arith.constant 0 : index
    %c0_13 = arith.constant 0 : index
    %24 = vector.load %arg3[%c0_11, %c0_12, %c0_13] : memref<2x8x1xf32, #tpu.memory_space<vmem>>, vector<2x8x1xf32>
    %c0_14 = arith.constant 0 : index
    %c0_15 = arith.constant 0 : index
    %25 = vector.load %arg7[%c0_14, %c0_15] : memref<2x128xf32, #tpu.memory_space<vmem>>, vector<2x128xf32>
    %26 = vector.broadcast %24 : vector<2x8x1xf32> to vector<2x8x128xf32>
    %27 = arith.mulf %23, %26 : vector<2x8x128xf32>
    %cst_16 = arith.constant dense<0.000000e+00> : vector<2x128xf32>
    %28 = vector.multi_reduction <add>, %27, %cst_16 [1] : vector<2x8x128xf32> to vector<2x128xf32>
    %29 = arith.addf %25, %28 : vector<2x128xf32>
    %c0_17 = arith.constant 0 : index
    %c0_18 = arith.constant 0 : index
    %30 = vector.load %arg7[%c0_17, %c0_18] : memref<2x128xf32, #tpu.memory_space<vmem>>, vector<2x128xf32>
    tpu.vector_store %arg7[%c0_17, %c0_18], %29 {strides = array<i32>} : memref<2x128xf32, #tpu.memory_space<vmem>>, vector<2x128xf32>,
    %c0_19 = arith.constant 0 : index
    %c0_20 = arith.constant 0 : index
    %31 = vector.load %arg8[%c0_19, %c0_20] : memref<2x1xf32, #tpu.memory_space<vmem>>, vector<2x1xf32>
    %cst_21 = arith.constant dense<0.000000e+00> : vector<2x1xf32>
    %32 = vector.multi_reduction <add>, %24, %cst_21 [1] : vector<2x8x1xf32> to vector<2x1xf32>
    %33 = arith.addf %31, %32 : vector<2x1xf32>
    %c0_22 = arith.constant 0 : index
    %c0_23 = arith.constant 0 : index
    %34 = vector.load %arg8[%c0_22, %c0_23] : memref<2x1xf32, #tpu.memory_space<vmem>>, vector<2x1xf32>
    tpu.vector_store %arg8[%c0_22, %c0_23], %33 {strides = array<i32>} : memref<2x1xf32, #tpu.memory_space<vmem>>, vector<2x1xf32>,
    %c1_i32 = arith.constant 1 : i32
    %35 = arith.cmpi eq, %arg1, %c1_i32 : i32
    %36 = arith.extui %35 : i1 to i32
    %c0_i32_24 = arith.constant 0 : i32
    %37 = arith.cmpi ne, %36, %c0_i32_24 : i32
    scf.if %37 {
      %c0_25 = arith.constant 0 : index
      %c0_26 = arith.constant 0 : index
      %38 = vector.load %arg8[%c0_25, %c0_26] : memref<2x1xf32, #tpu.memory_space<vmem>>, vector<2x1xf32>
      %cst_27 = arith.constant 9.99999971E-10 : f32
      %39 = vector.broadcast %cst_27 : f32 to vector<2x1xf32>
      %40 = arith.maximumf %38, %39 : vector<2x1xf32>
      %41 = tpu.reciprocal %40 {approx = true} : vector<2x1xf32> -> vector<2x1xf32>
      %c0_28 = arith.constant 0 : index
      %c0_29 = arith.constant 0 : index
      %42 = vector.load %arg7[%c0_28, %c0_29] : memref<2x128xf32, #tpu.memory_space<vmem>>, vector<2x128xf32>
      %43 = vector.broadcast %41 : vector<2x1xf32> to vector<2x128xf32>
      %44 = arith.mulf %42, %43 : vector<2x128xf32>
      %c0_30 = arith.constant 0 : index
      %c0_31 = arith.constant 0 : index
      %45 = vector.load %arg6[%c0_30, %c0_31] : memref<2x128xf32, #tpu.memory_space<vmem>>, vector<2x128xf32>
      tpu.vector_store %arg6[%c0_30, %c0_31], %44 {strides = array<i32>} : memref<2x128xf32, #tpu.memory_space<vmem>>, vector<2x128xf32>,
    } else {
    }
    return
  }
  func.func @transform_0(%arg0: i32, %arg1: i32) -> (i32, i32, i32) {
    %c0_i32 = arith.constant 0 : i32
    %c0_i32_0 = arith.constant 0 : i32
    return %arg0, %arg1, %c0_i32 : i32, i32, i32
  }
  func.func @transform_1(%arg0: i32, %arg1: i32) -> (i32, i32, i32) {
    %c0_i32 = arith.constant 0 : i32
    %c0_i32_0 = arith.constant 0 : i32
    return %arg0, %arg1, %c0_i32 : i32, i32, i32
  }
  func.func @transform_2(%arg0: i32, %arg1: i32) -> (i32, i32) {
    %c0_i32 = arith.constant 0 : i32
    %c0_i32_0 = arith.constant 0 : i32
    %c0_i32_1 = arith.constant 0 : i32
    return %c0_i32, %c0_i32_0 : i32, i32
  }
  func.func @transform_3(%arg0: i32, %arg1: i32) -> (i32, i32) {
    %c0_i32 = arith.constant 0 : i32
    %c0_i32_0 = arith.constant 0 : i32
    %c0_i32_1 = arith.constant 0 : i32
    return %c0_i32, %c0_i32_0 : i32, i32
  }
  func.func @transform_4(%arg0: i32, %arg1: i32) -> (i32, i32) {
    %c0_i32 = arith.constant 0 : i32
    %c0_i32_0 = arith.constant 0 : i32
    return %arg0, %c0_i32 : i32, i32
  }
}

</mosaic_0001>

<bundles_post_ra>
// kernel: tpu_custom_call.1
= control target key start
LH: loop header
LB: loop body
LE: loop exit
PB: predicated region body
PF: predicated region fallthrough
CT: control target
= control target key end

     0   :  { %9 = vsyncpa [#allocation7], 0  ;;  %s1012_s0 = inlined_call_operand.vmem [shape: bf16[2,16,128], index: 0, kind: input, shape index: {}]   ;;  %s1013_s1 = inlined_call_operand.vmem [shape: f32[2,16,1], index: 1, kind: input, shape index: {}]   ;;  %s1014_s2 = inlined_call_operand.hbm [shape: bf16[128,128], index: 2, kind: input, shape index: {}]   ;;  %s1015_s3 = inlined_call_operand.vmem [shape: f32[1,128], index: 3, kind: input, shape index: {}]   ;;  %s1016_s4 = inlined_call_operand.hbm [shape: f32[2,128], index: 4, kind: output, shape index: {}]  }
   0x1   :  { %10 = vsyncpa [#allocation8], 0  ;;  %s897_s15 = smov 0   ;;  %s899_s16 = smov 0  }
   0x2   :  { %s901_s17 = smov 0   ;;  %s903_s18 = smov 0  }
   0x3   :  { %s905_s19 = smov 0  }
   0x4 LB: > { %s624_s20 = sadd.s32 4294967295, %s863_s19   ;;  %s25_s21 = sadd.s32 1, %s859_s18  ;;  %s863_s19 = sphi %s905_s19, %s16_s19   ;;  %s859_s18 = sphi %s903_s18, %s1023_s18   ;;  %s855_s17 = sphi %s901_s17, %s1022_s17   ;;  %s851_s16 = sphi %s899_s16, %s1021_s16   ;;  %s847_s15 = sphi %s897_s15, %s1020_s15  }
   0x5   : > { %p26_p0 = scmp.ge.s32.totalorder %s25_s21, 2  ;;  %s37_s22 = sadd.s32 1, %s851_s16 }
   0x6   : > { %p44_p1 = scmp.ne.s32.totalorder %s851_s16, %s847_s15  ;;  %p45_p2 = scmp.eq.s32.totalorder %s863_s19, 0 }
   0x7   : > { %s1025_s21 = smov (%p26_p0, %s25_s21), 0  ;;  %p625_p4 = scmp.ge.s32.totalorder %s863_s19, 1 }
   0x8   : > { %p930_p3 = por %p45_p2, %p44_p1  ;;  %s33_s24 = ssub.s32 %s859_s18, %s1025_s21 }
   0x9   : > { %p157_p5 = scmp.lt.s32.totalorder %s863_s19, 3  ;;  %p35_p6 = scmp.eq.s32.totalorder %s33_s24, 0 }
   0xa   : > { %p944_p8 = scmp.eq.s32.totalorder %s624_s20, 0  ;;  %s168_s30 = sshll.u32 %s1014_s2, 4  ;;  %s169_s30 = int_to_ptr.hbm [resolvable:$true] %s168_s30 }
   0xb   : > { %p938_p7 = pnand %p625_p4, %p157_p5  ;;  %s865_s5 = smov [#allocation6]  }
   0xc   : > { %s949_s27 = scalar_select %p35_p6, %s851_s16, %s37_s22  }
   0xd   : > { %p695_p9 = pneg %p938_p7  ;;  %s170_s6 = sshll.u32 %s865_s5, 4  ;;  %s171_s6 = int_to_ptr.vmem [resolvable:$true] %s170_s6 }
   0xe   : > { %s866_s7 = smov 64   ;;  %s867_s8 = smov 4  }
   0xf   : > { %p696_p10 = pnand %p944_p8, %p695_p9  ;;  %p627_p11 = scmp.ge.s32.totalorder %s863_s19, 2 }
  0x11   : > { %698 = dma.hbm_to_vmem [thread:$0]  (!%p696_p10), %s169_s30, 1024, %s171_s6, [#allocation7], %s866_s7, %s866_s7, %s867_s8  }
  0x12   : > { %183 = sbr.rel (%p627_p11) target bundleno = 35 (0x23), region = 24 }
  0x17   : > { %186 = sbr.rel (!%p930_p3) target bundleno = 29 (0x1d), region = 28  ;;  %s188_s9 = sand.u32 (%p930_p3), 1, %s851_s16  }
  0x18   : > { %s629_s10 = sshll.u32 (%p930_p3), %s859_s18, 2  ;;  %s628_s11 = sshll.u32 (%p930_p3), %s188_s9, 3 }
  0x19   : > { %s195_s14 = scalar_lea.vmem (%p930_p3), %s1012_s0, %s629_s10  ;;  %s190_s22 = scalar_lea.vmem (%p930_p3), [#allocation4], %s628_s11 }
  0x1a   : > { %v212_v0 = vld [vmem:[%s195_s14] sm:$0xf] (%p930_p3)  ;;  %v214_v1 = vld [vmem:[%s195_s14 + $0x8] sm:$0xf] (%p930_p3) }
  0x1b   : > { %213 = vst [vmem:[%s190_s22] sm:$0xf] (%p930_p3), %v212_v0 }
  0x1c   : > { %215 = vst [vmem:[%s190_s22 + $0x4] sm:$0xf] %v214_v1 }
  0x1d PF: > { %243 = sbr.rel (!%p930_p3) target bundleno = 35 (0x23), region = 69  ;;  %s245_s24 = sand.u32 (%p930_p3), 1, %s851_s16  }
  0x1e   : > { %s631_s28 = sshll.u32 (%p930_p3), %s859_s18, 3  ;;  %s630_s29 = sshll.u32 (%p930_p3), %s245_s24, 4 }
  0x1f   : > { %s252_s6 = scalar_lea.vmem (%p930_p3), %s1013_s1, %s631_s28  ;;  %s247_s7 = scalar_lea.vmem (%p930_p3), [#allocation5], %s630_s29 }
  0x20   : > { %v283_v2 = vld [vmem:[%s252_s6] sm:$0xff] (%p930_p3)  ;;  %v285_v3 = vld [vmem:[%s252_s6 + $0x10] sm:$0xff] (%p930_p3) }
  0x21   : > { %284 = vst [vmem:[%s247_s7] sm:$0xff] (%p930_p3), %v283_v2 }
  0x22   : > { %286 = vst [vmem:[%s247_s7 + $0x8] sm:$0xff] %v285_v3 }
  0x23 PF: > { %295 = sbr.rel (%p938_p7) target bundleno = 392 (0x188), region = 107  ;;  %s298_s23 = sand.u32 (!%p938_p7), 1, %s847_s15  }
  0x24   : > { %s976_s8 = sshll.u32 (!%p938_p7), %s298_s23, 3  ;;  %s634_s9 = sshll.u32 (!%p938_p7), %s298_s23, 4 }
  0x25   : > { %s300_s10 = scalar_lea.vmem (!%p938_p7), [#allocation4], %s976_s8  ;;  %s307_s11 = scalar_lea.vmem (!%p938_p7), [#allocation5], %s634_s9 }
  0x28   : > { %838 = dma.done.wait (%p944_p8), [#allocation7], 1024  }
  0x29   : > { %840 = vsyncadd (%p944_p8), [#allocation7], 4294966272  ;;  %p636_p12 = scmp.ne.s32.totalorder %s855_s17, 0 }
  0x2b   : > { %339 = sbr.rel (%p636_p12) target bundleno = 51 (0x33), region = 123 }
  0x30   : > { %vm341_vm0 = vcmask 1024   ;;  %v868_v4 = vmov 0.0  }
  0x31   : > { %340 = vst [vmem:[#allocation2] sm:$0x3] %v868_v4 }
  0x32   : > { %342 = vst.msk [vmem:[#allocation3] sm:$0x3] %vm341_vm0, %v868_v4 }
  0x33 PF: > { %v686_v5 = vld [vmem:[#allocation6 + $0x38] sm:$0xff]  ;;  %vm486_vm1 = vcmask 7168   ;;  %v685_v6 = vld [vmem:[#allocation6 + $0x30] sm:$0xff]  ;;  %v869_v7 = vmov 0   ;;  %v684_v14 = vld [vmem:[#allocation6 + $0x28] sm:$0xff]  ;;  %vm480_vm2 = vcmask 1041409  }
  0x34   : > { %419 = vmatpush.bf16.msra.mxu0 %v686_v5  ;;  %750 = vset.pattern.permute.xlu0 %v869_v7  ;;  %v451_v8 = vld [vmem:[%s307_s11] sm:$0xff]  ;;  %v452_v9 = vld [vmem:[%s307_s11 + $0x8] sm:$0xff]  ;;  %vm506_vm3 = vcmask 1024   ;;  %p673_p13 = scmp.ne.s32.totalorder %s855_s17, 1 }
  0x35   : > { %456 = vperm.xlu0 %750, %v451_v8   ;;  %v487_v10 = vsel %vm486_vm1, %v451_v8, 0.0  ;;  %v494_v11 = vsel %vm486_vm1, %v452_v9, 0.0  ;;  %v683_v19 = vld [vmem:[#allocation6 + $0x20] sm:$0xff]  ;;  %v682_v24 = vld [vmem:[#allocation6 + $0x18] sm:$0xff]  ;;  %v681_v29 = vld [vmem:[#allocation6 + $0x10] sm:$0xff] }
  0x36   : > { %v488_v12 = vrot.slane %v487_v10, 4  ;;  %v495_v13 = vrot.slane %v494_v11, 4  ;;  %v680_v31 = vld [vmem:[#allocation6 + $0x8] sm:$0xff]  ;;  %v679_v32 = vld [vmem:[#allocation6] sm:$0xff]  ;;  %v678_v33 = vld [vmem:[%s300_s10] sm:$0xff] }
  0x37   : > { %v751_v34 = vld [vmem:[%s1015_s3] ss:$0 sm:$0xff] }
  0x38   : > { %420 = vmatpush.bf16.msra.mxu0 %v685_v6  ;;  %v489_v15 = vadd.f32 %v488_v12, %v487_v10  ;;  %v496_v16 = vadd.f32 %v495_v13, %v494_v11  ;;  %v453_v8 = vld [vmem:[#allocation2] sm:$0x3] }
  0x39   : > { %v485_v26 = vld [vmem:[#allocation3] sm:$0x3] }
  0x3a   : > { %v490_v17 = vrot.slane %v489_v15, 2  ;;  %v497_v18 = vrot.slane %v496_v16, 2 }
  0x3c   : > { %421 = vmatpush.bf16.msra.mxu0 %v684_v14  ;;  %v491_v20 = vadd.f32 %v490_v17, %v489_v15  ;;  %v498_v21 = vadd.f32 %v497_v18, %v496_v16 }
  0x3d   : > { %461 = vperm.xlu0 %750, %v452_v9  }
  0x3e   : > { %v492_v22 = vrot.slane %v491_v20, 1  ;;  %v499_v23 = vrot.slane %v498_v21, 1 }
  0x40   : > { %422 = vmatpush.bf16.msra.mxu0 %v683_v19  ;;  %v493_v25 = vadd.f32 %v492_v22, %v491_v20  ;;  %v500_v27 = vadd.f32 %v499_v23, %v498_v21 }
  0x42   : > { %v503_v28 = vsel %vm480_vm2, %v500_v27, %v493_v25 }
  0x43   : > { %v505_v30 = vadd.f32 %v503_v28, %v485_v26 }
  0x44   : > { %423 = vmatpush.bf16.msra.mxu0 %v682_v24 }
  0x45   : > { %507 = vst.msk [vmem:[#allocation3] sm:$0x3] %vm506_vm3, %v505_v30 }
  0x48   : > { %424 = vmatpush.bf16.msra.mxu0 %v681_v29 }
  0x4c   : > { %425 = vmatpush.bf16.msra.mxu0 %v680_v31 }
  0x50   : > { %426 = vmatpush.bf16.msra.mxu0 %v679_v32 }
  0x53   : > { %427 = vmatmul.bf16.vlgmr.msra.gmra.mxu0 %v678_v33 }
  0xa7   : > { %v457_v52 = vpop.permute.xlu0 %456 }
  0xaf   : > { %v462_v61 = vpop.permute.xlu0 %461 }
  0xd0   : > { %v428_v35 = vpop.f32.mrf.mxu0 }
  0xd1   : > { %v429_v36 = vadd.f32 %v751_v34, %v428_v35 }
  0xd3   : > { %v435_v37 = vmul.f32 0.044715, %v429_v36  ;;  %v433_v50 = vmul.f32 0.5, %v429_v36 }
  0xd5   : > { %v437_v38 = vmul.f32 %v435_v37, %v429_v36 }
  0xd7   : > { %v439_v39 = vmul.f32 %v437_v38, %v429_v36 }
  0xd8   : > { %v430_v40 = vpop.f32.mrf.mxu0 }
  0xd9   : > { %v431_v41 = vadd.f32 %v751_v34, %v430_v40  ;;  %v441_v42 = vadd.f32 %v439_v39, %v429_v36 }
  0xdb   : > { %v436_v43 = vmul.f32 0.044715, %v431_v41  ;;  %v443_v44 = vmul.f32 0.7978846, %v441_v42  ;;  %v434_v58 = vmul.f32 0.5, %v431_v41 }
  0xdd   : > { %752 = vtanh.f32 %v443_v44  ;;  %v438_v45 = vmul.f32 %v436_v43, %v431_v41 }
  0xdf   : > { %v440_v46 = vmul.f32 %v438_v45, %v431_v41 }
  0xe1   : > { %v442_v47 = vadd.f32 %v440_v46, %v431_v41 }
  0xe3   : > { %v753_v48 = vpop.eup %752  ;;  %v444_v49 = vmul.f32 0.7978846, %v442_v47 }
  0xe4   : > { %v447_v51 = vadd.f32 1.0, %v753_v48 }
  0xe5   : > { %754 = vtanh.f32 %v444_v49 }
  0xe6   : > { %v449_v53 = vmul.f32 %v447_v51, %v433_v50 }
  0xe8   : > { %v464_v54 = vmul.f32 %v457_v52, %v449_v53 }
  0xea   : > { %v466_v55 = vrot.slane %v464_v54, 4 }
  0xeb   : > { %v755_v56 = vpop.eup %754 }
  0xec   : > { %v467_v57 = vadd.f32 %v466_v55, %v464_v54  ;;  %v448_v59 = vadd.f32 1.0, %v755_v56 }
  0xee   : > { %v450_v60 = vmul.f32 %v448_v59, %v434_v58  ;;  %v468_v62 = vrot.slane %v467_v57, 2 }
  0xf0   : > { %v465_v63 = vmul.f32 %v462_v61, %v450_v60  ;;  %v469_v1 = vadd.f32 %v468_v62, %v467_v57 }
  0xf2   : > { %v472_v0 = vrot.slane %v465_v63, 4  ;;  %v470_v4 = vrot.slane %v469_v1, 1 }
  0xf4   : > { %v473_v2 = vadd.f32 %v472_v0, %v465_v63  ;;  %v471_v7 = vadd.f32 %v470_v4, %v469_v1 }
  0xf6   : > { %v474_v3 = vrot.slane %v473_v2, 2 }
  0xf8   : > { %v475_v5 = vadd.f32 %v474_v3, %v473_v2 }
  0xfa   : > { %v476_v6 = vrot.slane %v475_v5, 1 }
  0xfc   : > { %v477_v9 = vadd.f32 %v476_v6, %v475_v5 }
  0xfd   : > { %511 = sbr.rel (%p673_p13) target bundleno = 386 (0x182), region = 127 }
  0xfe   : > { %v481_v10 = vsel %vm480_vm2, %v477_v9, %v471_v7 }
  0xff   : > { %v483_v11 = vadd.f32 %v481_v10, %v453_v8 }
 0x101   : > { %484 = vst [vmem:[#allocation2] sm:$0x3] %v483_v11 }
 0x102   : > { %v512_v12 = vld [vmem:[#allocation3] sm:$0x3]  ;;  %v870_v13 = vmov 0  }
 0x103   : > { %756 = vset.pattern.permute.xlu0 %v870_v13  ;;  %v513_v14 = vmax.f32 %v512_v12, 1e-09 }
 0x105   : > { %757 = vrcp.f32 %v513_v14 }
 0x108   : > { %v515_v16 = vld [vmem:[#allocation2] sm:$0x3] }
 0x10b   : > { %v758_v15 = vpop.eup %757 }
 0x10c   : > { %518 = vperm.xlu0 %756, %v758_v15  }
 0x17e   : > { %v519_v17 = vpop.permute.xlu0 %518 }
 0x17f   : > { %v521_v18 = vmul.f32 %v519_v17, %v515_v16 }
 0x181   : > { %522 = vst [vmem:[#allocation9] sm:$0x3] %v521_v18 }
 0x182 PF: > { %p701_p0 = scmp.eq.s32.totalorder %s624_s20, 1  ;;  %s533_s17 = sshll.u32 %s1016_s4, 4  ;;  %s534_s17 = int_to_ptr.hbm [resolvable:$true] %s533_s17 }
 0x183   : > { %s871_s13 = smov [#allocation9]  }
 0x184   : > { %s531_s14 = sshll.u32 %s871_s13, 4  ;;  %s532_s14 = int_to_ptr.vmem [resolvable:$true] %s531_s14 }
 0x185   : > { %692 = dma.vmem_to_hbm [thread:$0]  (%p701_p0), %s532_s14, 32, %s534_s17, [#allocation8]  }
 0x186   : > { %842 = dma.done.wait (%p701_p0), [#allocation8], 32  }
 0x187   : > { %844 = vsyncadd (%p701_p0), [#allocation8], 4294967264 }
 0x188 PF: > { %s16_s19 = sadd.s32 1, %s863_s19   ;;  %s1020_s15 = smov %s851_s16 }
 0x189   : > { %p13_p1 = scmp.ge.s32.totalorder %s16_s19, 4   ;;  %s1021_s16 = smov %s949_s27 }
 0x18a   : > { %s1022_s17 = smov %s859_s18  ;;  %s1023_s18 = smov %s1025_s21 }
 0x18b   :  { %15 = sbr.rel (!%p13_p1) target bundleno = 4 (0x4), region = 169 }
 0x190   :  { %547 = vsyncpa [#allocation7], 1 }
 0x191   :  { %549 = vsyncpa [#allocation7 + $0x1], 1 }
 0x192   :  { %550 = vsyncpa [#allocation8], 1 }
 0x193   :  { %552 = vsyncpa [#allocation8 + $0x1], 1 }

</bundles_post_ra>
